<compile_context>
chip_gen: v7x
topology: tpu7x:2x2x1
jax: 0.10.0
libtpu: 0.0.40
codegen_flags: <defaults>
</compile_context>

<pallas_src>
import functools

import jax
import jax.numpy as jnp
from jax import lax
from jax.experimental import pallas as pl
from jax.experimental.pallas import tpu as pltpu


def _fused_unet_kernel(x_ref, m_ref, w1_ref, b1_ref, w2_ref, b2_ref, o_ref,
                       col1_ref, col2_ref, *, width):
    """One grid step = one image; both Conv3x3+ReLU layers fused.

    x_ref : (1, Cin, HW)    activations, compute dtype, flat spatial on lanes
    m_ref : (9, HW)         per-tap {0,1} masks (zero out-of-image taps = padding)
    w1_ref: (Cmid, 9*Cin)   conv1 weights, tap-major im2col row order
    b1_ref: (Cmid, 1)       conv1 bias (f32)
    w2_ref: (Cout, 9*Cmid)  conv2 weights
    b2_ref: (Cout, 1)       conv2 bias (f32)
    o_ref : (1, Cout, HW)   output (lane-dense store, already NCHW order)
    col1_ref / col2_ref :   VMEM im2col scratch, (9*Cin, HW) / (9*Cmid, HW)
    """
    hw = x_ref.shape[-1]
    masks = m_ref[...]                                     # (9, HW), resident

    def im2col(src, col_ref):
        # Build the (9*C, HW) im2col slab.  Tap (dy, dx) is a roll of the flat
        # spatial axis by (dy-1)*W + (dx-1) (XLU lane rotate); positions whose
        # source pixel lies outside the image (incl. roll wrap-around) are zeroed
        # by the precomputed per-tap mask, which reproduces padding=1 exactly.
        c = src.shape[0]
        for dy in range(3):
            for dx in range(3):
                t = 3 * dy + dx
                off = (dy - 1) * width + (dx - 1)
                tap = src if off == 0 else pltpu.roll(src, shift=(-off) % hw, axis=1)
                if not (dy == 1 and dx == 1):              # centre tap needs no mask
                    tap = tap * masks[t:t + 1, :]
                col_ref[pl.ds(t * c, c), :] = tap

    x = x_ref[0]                                           # (Cin, HW)

    # ---- conv1 + bias + ReLU: one MXU GEMM, K = 9*Cin, f32 accumulation ----------
    im2col(x, col1_ref)
    acc1 = jnp.dot(w1_ref[...], col1_ref[...], preferred_element_type=jnp.float32)
    y1 = jnp.maximum(acc1 + b1_ref[...], 0.0).astype(x.dtype)      # (Cmid, HW)

    # ---- conv2 + bias + ReLU on the VMEM-resident intermediate -------------------
    im2col(y1, col2_ref)
    acc2 = jnp.dot(w2_ref[...], col2_ref[...], preferred_element_type=jnp.float32)
    y2 = jnp.maximum(acc2 + b2_ref[...], 0.0)                       # (Cout, HW) f32

    o_ref[0] = y2.astype(o_ref.dtype)


def _tap_masks(H, W, dtype):
    """(9, H*W) multiplicative masks: mask[t, i*W + j] == 1 iff the pixel read by
    tap t = 3*dy + dx for output (i, j), i.e. (i+dy-1, j+dx-1), is inside the image
    (Conv2d padding=1 semantics)."""
    row = jnp.arange(H, dtype=jnp.int32)[:, None]
    col = jnp.arange(W, dtype=jnp.int32)[None, :]
    masks = []
    for dy in range(3):
        for dx in range(3):
            ok = jnp.ones((H, W), dtype=jnp.bool_)
            if dy == 0:
                ok = ok & (row >= 1)
            if dy == 2:
                ok = ok & (row <= H - 2)
            if dx == 0:
                ok = ok & (col >= 1)
            if dx == 2:
                ok = ok & (col <= W - 2)
            masks.append(ok.reshape(H * W))
    return jnp.stack(masks).astype(dtype)


def unet_module_forward(x_nchw, w1, b1, w2, b2, *, compute_dtype=jnp.bfloat16):
    """UNetModule forward: Conv3x3(pad=1)+ReLU -> Conv3x3(pad=1)+ReLU, bn=False.

    x_nchw: (N, Cin, H, W); w1: (Cmid, Cin, 3, 3); b1: (Cmid,);
    w2: (Cout, Cmid, 3, 3); b2: (Cout,).  Returns (N, Cout, H, W) in x's dtype.
    compute_dtype: dtype fed to the MXU (bf16 default; accumulation stays f32).
    """
    N, Cin, H, W = x_nchw.shape
    Cmid = w1.shape[0]
    Cout = w2.shape[0]
    HW = H * W
    out_dtype = x_nchw.dtype

    # NCHW -> (N, C, H*W) is a pure metadata reshape: spatial lands on the lane axis.
    x_flat = x_nchw.reshape(N, Cin, HW).astype(compute_dtype)

    # (Co, Ci, 3, 3) -> (Co, dy, dx, Ci) -> (Co, 9*Ci): tap-major rows line up with
    # the im2col scratch ordering (tap t = 3*dy + dx, then channel).
    w1_mat = jnp.transpose(w1, (0, 2, 3, 1)).reshape(Cmid, 9 * Cin).astype(compute_dtype)
    w2_mat = jnp.transpose(w2, (0, 2, 3, 1)).reshape(Cout, 9 * Cmid).astype(compute_dtype)
    b1_col = b1.reshape(Cmid, 1).astype(jnp.float32)
    b2_col = b2.reshape(Cout, 1).astype(jnp.float32)
    masks = _tap_masks(H, W, compute_dtype)                # (9, HW)

    cdt = jnp.dtype(compute_dtype).itemsize
    odt = jnp.dtype(out_dtype).itemsize

    # VMEM budget: double-buffered in/out blocks + resident weights/masks + scratch
    # + f32 accumulators; clamped to the chip's capacity (v7x has only 64 MiB).
    block_bytes = (
        2 * (Cin * HW * cdt)                               # x block (double buffered)
        + 2 * (Cout * HW * odt)                            # out block (double buffered)
        + 9 * HW * cdt                                     # masks (resident)
        + (Cmid * 9 * Cin + Cout * 9 * Cmid) * cdt         # weights
        + (Cmid + Cout) * 4                                # biases
        + (9 * Cin + 9 * Cmid) * HW * cdt                  # im2col scratch
        + (Cmid + Cout) * HW * 4                           # f32 accumulators / y1
    )
    try:
        vmem_cap = pltpu.get_tpu_info().vmem_capacity_bytes
    except Exception:
        vmem_cap = 64 * 1024 * 1024                        # conservative (v7x) default
    vmem_limit = int(min(int(0.75 * vmem_cap),
                         max(32 * 1024 * 1024, 2 * block_bytes)))

    flops = 2 * N * HW * 9 * (Cin * Cmid + Cmid * Cout)
    bytes_accessed = (
        N * Cin * HW * cdt + N * Cout * HW * odt + 9 * HW * cdt
        + (Cmid * 9 * Cin + Cout * 9 * Cmid) * cdt + (Cmid + Cout) * 4
    )

    kernel = functools.partial(_fused_unet_kernel, width=W)

    out_flat = pl.pallas_call(
        kernel,
        out_shape=jax.ShapeDtypeStruct((N, Cout, HW), out_dtype),
        grid_spec=pltpu.PrefetchScalarGridSpec(
            num_scalar_prefetch=0,
            grid=(N,),
            in_specs=[
                pl.BlockSpec((1, Cin, HW), lambda n: (n, 0, 0)),
                pl.BlockSpec((9, HW), lambda n: (0, 0)),
                pl.BlockSpec((Cmid, 9 * Cin), lambda n: (0, 0)),
                pl.BlockSpec((Cmid, 1), lambda n: (0, 0)),
                pl.BlockSpec((Cout, 9 * Cmid), lambda n: (0, 0)),
                pl.BlockSpec((Cout, 1), lambda n: (0, 0)),
            ],
            out_specs=pl.BlockSpec((1, Cout, HW), lambda n: (n, 0, 0)),
            scratch_shapes=[
                pltpu.VMEM((9 * Cin, HW), compute_dtype),   # im2col for conv1
                pltpu.VMEM((9 * Cmid, HW), compute_dtype),  # im2col for conv2
            ],
        ),
        compiler_params=pltpu.CompilerParams(
            dimension_semantics=("parallel",),
            vmem_limit_bytes=vmem_limit,
        ),
        cost_estimate=pl.CostEstimate(
            flops=int(flops), transcendentals=0, bytes_accessed=int(bytes_accessed)
        ),
    )(x_flat, masks, w1_mat, b1_col, w2_mat, b2_col)

    # (N, Cout, H*W) -> (N, Cout, H, W) is a free reshape (already NCHW order).
    return out_flat.reshape(N, Cout, H, W)


# --- pure-JAX reference (same semantics as PyTorch Conv2d(pad=1) + ReLU) -------------
def _ref_conv2d_relu(x_nchw, w, b):
    y = lax.conv_general_dilated(
        x_nchw.astype(jnp.float32),
        w.astype(jnp.float32),
        window_strides=(1, 1),
        padding=((1, 1), (1, 1)),
        dimension_numbers=("NCHW", "OIHW", "NCHW"),
        precision=lax.Precision.HIGHEST,
    )
    return jnp.maximum(y + b.astype(jnp.float32)[None, :, None, None], 0.0)


if __name__ == "__main__":
    key = jax.random.PRNGKey(0)
    k1, k2, k3, k4, k5 = jax.random.split(key, 5)

    N, Cin, H, W = 2, 4, 16, 16
    Cout = 8

    x = jax.random.normal(k1, (N, Cin, H, W), dtype=jnp.float32)
    w1 = jax.random.normal(k2, (Cout, Cin, 3, 3), dtype=jnp.float32) * 0.2
    b1 = jax.random.normal(k3, (Cout,), dtype=jnp.float32) * 0.1
    w2 = jax.random.normal(k4, (Cout, Cout, 3, 3), dtype=jnp.float32) * 0.2
    b2 = jax.random.normal(k5, (Cout,), dtype=jnp.float32) * 0.1

    ref = _ref_conv2d_relu(_ref_conv2d_relu(x, w1, b1), w2, b2)

    # 1) Exact-algorithm check: f32 all the way through the fused kernel.
    out_f32 = jax.block_until_ready(
        unet_module_forward(x, w1, b1, w2, b2, compute_dtype=jnp.float32))
    assert out_f32.shape == (N, Cout, H, W)
    err_f32 = float(jnp.max(jnp.abs(out_f32.astype(jnp.float32) - ref)))
    assert jnp.allclose(out_f32.astype(jnp.float32), ref, atol=2e-4, rtol=2e-4), err_f32

    # 2) Default perf path: bf16 MXU inputs, f32 accumulation (looser tolerance).
    out = jax.block_until_ready(unet_module_forward(x, w1, b1, w2, b2))
    assert out.shape == (N, Cout, H, W)
    err_bf16 = float(jnp.max(jnp.abs(out.astype(jnp.float32) - ref)))
    assert jnp.allclose(out.astype(jnp.float32), ref, atol=5e-2, rtol=5e-2), err_bf16

    print("KERNEL_OK")
</pallas_src>

<mosaic_0001>
module attributes {stable_mosaic.version = 11 : i64} {
  func.func @_fused_unet_kernel(%arg0: i32, %arg1: memref<1x4x256xf32, #tpu.memory_space<vmem>>, %arg2: memref<9x256xf32, #tpu.memory_space<vmem>>, %arg3: memref<8x36xf32, #tpu.memory_space<vmem>>, %arg4: memref<8x1xf32, #tpu.memory_space<vmem>>, %arg5: memref<8x72xf32, #tpu.memory_space<vmem>>, %arg6: memref<8x1xf32, #tpu.memory_space<vmem>>, %arg7: memref<1x8x256xf32, #tpu.memory_space<vmem>>, %arg8: memref<36x256xf32, #tpu.memory_space<vmem>>, %arg9: memref<72x256xf32, #tpu.memory_space<vmem>>) attributes {dimension_semantics = [#tpu.dimension_semantics<parallel>], iteration_bounds = array<i64: 2>, scalar_prefetch = 0 : i64, scratch_operands = 2 : i64, tpu.core_type = #tpu.core_type<tc>, window_params = [{transform_indices = @transform_0, window_bounds = array<i64: 1, 4, 256>}, {pipeline_mode = #tpu.pipeline_mode<synchronous>, transform_indices = @transform_1, window_bounds = array<i64: 9, 256>}, {pipeline_mode = #tpu.pipeline_mode<synchronous>, transform_indices = @transform_2, window_bounds = array<i64: 8, 36>}, {pipeline_mode = #tpu.pipeline_mode<synchronous>, transform_indices = @transform_3, window_bounds = array<i64: 8, 1>}, {pipeline_mode = #tpu.pipeline_mode<synchronous>, transform_indices = @transform_4, window_bounds = array<i64: 8, 72>}, {pipeline_mode = #tpu.pipeline_mode<synchronous>, transform_indices = @transform_5, window_bounds = array<i64: 8, 1>}, {transform_indices = @transform_6, window_bounds = array<i64: 1, 8, 256>}]} {
    %c0 = arith.constant 0 : index
    %c0_0 = arith.constant 0 : index
    %0 = vector.load %arg2[%c0, %c0_0] : memref<9x256xf32, #tpu.memory_space<vmem>>, vector<9x256xf32>
    %c0_1 = arith.constant 0 : index
    %c0_2 = arith.constant 0 : index
    %c0_3 = arith.constant 0 : index
    %1 = vector.load %arg1[%c0_1, %c0_2, %c0_3] : memref<1x4x256xf32, #tpu.memory_space<vmem>>, vector<1x4x256xf32>
    %2 = vector.shape_cast %1 : vector<1x4x256xf32> to vector<4x256xf32>
    %c17_i32 = arith.constant 17 : i32
    %3 = tpu.dynamic_rotate %2 by %c17_i32 dim 1 : vector<4x256xf32>, i32 -> vector<4x256xf32>
    %4 = vector.extract_strided_slice %0 {offsets = [0, 0], sizes = [1, 256], strides = [1, 1]} : vector<9x256xf32> to vector<1x256xf32>
    %5 = vector.broadcast %4 : vector<1x256xf32> to vector<4x256xf32>
    %6 = arith.mulf %3, %5 : vector<4x256xf32>
    %c0_4 = arith.constant 0 : index
    %c0_5 = arith.constant 0 : index
    %7 = vector.load %arg8[%c0_4, %c0_5] : memref<36x256xf32, #tpu.memory_space<vmem>>, vector<4x256xf32>
    tpu.vector_store %arg8[%c0_4, %c0_5], %6 {strides = array<i32>} : memref<36x256xf32, #tpu.memory_space<vmem>>, vector<4x256xf32>,
    %c16_i32 = arith.constant 16 : i32
    %8 = tpu.dynamic_rotate %2 by %c16_i32 dim 1 : vector<4x256xf32>, i32 -> vector<4x256xf32>
    %9 = vector.extract_strided_slice %0 {offsets = [1, 0], sizes = [1, 256], strides = [1, 1]} : vector<9x256xf32> to vector<1x256xf32>
    %10 = vector.broadcast %9 : vector<1x256xf32> to vector<4x256xf32>
    %11 = arith.mulf %8, %10 : vector<4x256xf32>
    %c4 = arith.constant 4 : index
    %c0_6 = arith.constant 0 : index
    %12 = vector.load %arg8[%c4, %c0_6] : memref<36x256xf32, #tpu.memory_space<vmem>>, vector<4x256xf32>
    tpu.vector_store %arg8[%c4, %c0_6], %11 {strides = array<i32>} : memref<36x256xf32, #tpu.memory_space<vmem>>, vector<4x256xf32>,
    %c15_i32 = arith.constant 15 : i32
    %13 = tpu.dynamic_rotate %2 by %c15_i32 dim 1 : vector<4x256xf32>, i32 -> vector<4x256xf32>
    %14 = vector.extract_strided_slice %0 {offsets = [2, 0], sizes = [1, 256], strides = [1, 1]} : vector<9x256xf32> to vector<1x256xf32>
    %15 = vector.broadcast %14 : vector<1x256xf32> to vector<4x256xf32>
    %16 = arith.mulf %13, %15 : vector<4x256xf32>
    %c8 = arith.constant 8 : index
    %c0_7 = arith.constant 0 : index
    %17 = vector.load %arg8[%c8, %c0_7] : memref<36x256xf32, #tpu.memory_space<vmem>>, vector<4x256xf32>
    tpu.vector_store %arg8[%c8, %c0_7], %16 {strides = array<i32>} : memref<36x256xf32, #tpu.memory_space<vmem>>, vector<4x256xf32>,
    %c1_i32 = arith.constant 1 : i32
    %18 = tpu.dynamic_rotate %2 by %c1_i32 dim 1 : vector<4x256xf32>, i32 -> vector<4x256xf32>
    %19 = vector.extract_strided_slice %0 {offsets = [3, 0], sizes = [1, 256], strides = [1, 1]} : vector<9x256xf32> to vector<1x256xf32>
    %20 = vector.broadcast %19 : vector<1x256xf32> to vector<4x256xf32>
    %21 = arith.mulf %18, %20 : vector<4x256xf32>
    %c12 = arith.constant 12 : index
    %c0_8 = arith.constant 0 : index
    %22 = vector.load %arg8[%c12, %c0_8] : memref<36x256xf32, #tpu.memory_space<vmem>>, vector<4x256xf32>
    tpu.vector_store %arg8[%c12, %c0_8], %21 {strides = array<i32>} : memref<36x256xf32, #tpu.memory_space<vmem>>, vector<4x256xf32>,
    %c16 = arith.constant 16 : index
    %c0_9 = arith.constant 0 : index
    %23 = vector.load %arg8[%c16, %c0_9] : memref<36x256xf32, #tpu.memory_space<vmem>>, vector<4x256xf32>
    tpu.vector_store %arg8[%c16, %c0_9], %2 {strides = array<i32>} : memref<36x256xf32, #tpu.memory_space<vmem>>, vector<4x256xf32>,
    %c255_i32 = arith.constant 255 : i32
    %24 = tpu.dynamic_rotate %2 by %c255_i32 dim 1 : vector<4x256xf32>, i32 -> vector<4x256xf32>
    %25 = vector.extract_strided_slice %0 {offsets = [5, 0], sizes = [1, 256], strides = [1, 1]} : vector<9x256xf32> to vector<1x256xf32>
    %26 = vector.broadcast %25 : vector<1x256xf32> to vector<4x256xf32>
    %27 = arith.mulf %24, %26 : vector<4x256xf32>
    %c20 = arith.constant 20 : index
    %c0_10 = arith.constant 0 : index
    %28 = vector.load %arg8[%c20, %c0_10] : memref<36x256xf32, #tpu.memory_space<vmem>>, vector<4x256xf32>
    tpu.vector_store %arg8[%c20, %c0_10], %27 {strides = array<i32>} : memref<36x256xf32, #tpu.memory_space<vmem>>, vector<4x256xf32>,
    %c241_i32 = arith.constant 241 : i32
    %29 = tpu.dynamic_rotate %2 by %c241_i32 dim 1 : vector<4x256xf32>, i32 -> vector<4x256xf32>
    %30 = vector.extract_strided_slice %0 {offsets = [6, 0], sizes = [1, 256], strides = [1, 1]} : vector<9x256xf32> to vector<1x256xf32>
    %31 = vector.broadcast %30 : vector<1x256xf32> to vector<4x256xf32>
    %32 = arith.mulf %29, %31 : vector<4x256xf32>
    %c24 = arith.constant 24 : index
    %c0_11 = arith.constant 0 : index
    %33 = vector.load %arg8[%c24, %c0_11] : memref<36x256xf32, #tpu.memory_space<vmem>>, vector<4x256xf32>
    tpu.vector_store %arg8[%c24, %c0_11], %32 {strides = array<i32>} : memref<36x256xf32, #tpu.memory_space<vmem>>, vector<4x256xf32>,
    %c240_i32 = arith.constant 240 : i32
    %34 = tpu.dynamic_rotate %2 by %c240_i32 dim 1 : vector<4x256xf32>, i32 -> vector<4x256xf32>
    %35 = vector.extract_strided_slice %0 {offsets = [7, 0], sizes = [1, 256], strides = [1, 1]} : vector<9x256xf32> to vector<1x256xf32>
    %36 = vector.broadcast %35 : vector<1x256xf32> to vector<4x256xf32>
    %37 = arith.mulf %34, %36 : vector<4x256xf32>
    %c28 = arith.constant 28 : index
    %c0_12 = arith.constant 0 : index
    %38 = vector.load %arg8[%c28, %c0_12] : memref<36x256xf32, #tpu.memory_space<vmem>>, vector<4x256xf32>
    tpu.vector_store %arg8[%c28, %c0_12], %37 {strides = array<i32>} : memref<36x256xf32, #tpu.memory_space<vmem>>, vector<4x256xf32>,
    %c239_i32 = arith.constant 239 : i32
    %39 = tpu.dynamic_rotate %2 by %c239_i32 dim 1 : vector<4x256xf32>, i32 -> vector<4x256xf32>
    %40 = vector.extract_strided_slice %0 {offsets = [8, 0], sizes = [1, 256], strides = [1, 1]} : vector<9x256xf32> to vector<1x256xf32>
    %41 = vector.broadcast %40 : vector<1x256xf32> to vector<4x256xf32>
    %42 = arith.mulf %39, %41 : vector<4x256xf32>
    %c32 = arith.constant 32 : index
    %c0_13 = arith.constant 0 : index
    %43 = vector.load %arg8[%c32, %c0_13] : memref<36x256xf32, #tpu.memory_space<vmem>>, vector<4x256xf32>
    tpu.vector_store %arg8[%c32, %c0_13], %42 {strides = array<i32>} : memref<36x256xf32, #tpu.memory_space<vmem>>, vector<4x256xf32>,
    %c0_14 = arith.constant 0 : index
    %c0_15 = arith.constant 0 : index
    %44 = vector.load %arg3[%c0_14, %c0_15] : memref<8x36xf32, #tpu.memory_space<vmem>>, vector<8x36xf32>
    %c0_16 = arith.constant 0 : index
    %c0_17 = arith.constant 0 : index
    %45 = vector.load %arg8[%c0_16, %c0_17] : memref<36x256xf32, #tpu.memory_space<vmem>>, vector<36x256xf32>
    %cst = arith.constant dense<0.000000e+00> : vector<8x256xf32>
    %46 = tpu.matmul %44, %45, %cst {dimension_numbers = #tpu.dot_dimension_numbers<[1], [0], [0], [1], [0, 0, 1, 1], [], []>} : vector<8x36xf32>, vector<36x256xf32>, vector<8x256xf32> -> vector<8x256xf32>
    %c0_18 = arith.constant 0 : index
    %c0_19 = arith.constant 0 : index
    %47 = vector.load %arg4[%c0_18, %c0_19] : memref<8x1xf32, #tpu.memory_space<vmem>>, vector<8x1xf32>
    %48 = vector.broadcast %47 : vector<8x1xf32> to vector<8x256xf32>
    %49 = arith.addf %46, %48 : vector<8x256xf32>
    %cst_20 = arith.constant 0.000000e+00 : f32
    %50 = vector.broadcast %cst_20 : f32 to vector<8x256xf32>
    %51 = arith.maximumf %49, %50 : vector<8x256xf32>
    %c17_i32_21 = arith.constant 17 : i32
    %52 = tpu.dynamic_rotate %51 by %c17_i32_21 dim 1 : vector<8x256xf32>, i32 -> vector<8x256xf32>
    %53 = vector.extract_strided_slice %0 {offsets = [0, 0], sizes = [1, 256], strides = [1, 1]} : vector<9x256xf32> to vector<1x256xf32>
    %54 = vector.broadcast %53 : vector<1x256xf32> to vector<8x256xf32>
    %55 = arith.mulf %52, %54 : vector<8x256xf32>
    %c0_22 = arith.constant 0 : index
    %c0_23 = arith.constant 0 : index
    %56 = vector.load %arg9[%c0_22, %c0_23] : memref<72x256xf32, #tpu.memory_space<vmem>>, vector<8x256xf32>
    tpu.vector_store %arg9[%c0_22, %c0_23], %55 {strides = array<i32>} : memref<72x256xf32, #tpu.memory_space<vmem>>, vector<8x256xf32>,
    %c16_i32_24 = arith.constant 16 : i32
    %57 = tpu.dynamic_rotate %51 by %c16_i32_24 dim 1 : vector<8x256xf32>, i32 -> vector<8x256xf32>
    %58 = vector.extract_strided_slice %0 {offsets = [1, 0], sizes = [1, 256], strides = [1, 1]} : vector<9x256xf32> to vector<1x256xf32>
    %59 = vector.broadcast %58 : vector<1x256xf32> to vector<8x256xf32>
    %60 = arith.mulf %57, %59 : vector<8x256xf32>
    %c8_25 = arith.constant 8 : index
    %c0_26 = arith.constant 0 : index
    %61 = vector.load %arg9[%c8_25, %c0_26] : memref<72x256xf32, #tpu.memory_space<vmem>>, vector<8x256xf32>
    tpu.vector_store %arg9[%c8_25, %c0_26], %60 {strides = array<i32>} : memref<72x256xf32, #tpu.memory_space<vmem>>, vector<8x256xf32>,
    %c15_i32_27 = arith.constant 15 : i32
    %62 = tpu.dynamic_rotate %51 by %c15_i32_27 dim 1 : vector<8x256xf32>, i32 -> vector<8x256xf32>
    %63 = vector.extract_strided_slice %0 {offsets = [2, 0], sizes = [1, 256], strides = [1, 1]} : vector<9x256xf32> to vector<1x256xf32>
    %64 = vector.broadcast %63 : vector<1x256xf32> to vector<8x256xf32>
    %65 = arith.mulf %62, %64 : vector<8x256xf32>
    %c16_28 = arith.constant 16 : index
    %c0_29 = arith.constant 0 : index
    %66 = vector.load %arg9[%c16_28, %c0_29] : memref<72x256xf32, #tpu.memory_space<vmem>>, vector<8x256xf32>
    tpu.vector_store %arg9[%c16_28, %c0_29], %65 {strides = array<i32>} : memref<72x256xf32, #tpu.memory_space<vmem>>, vector<8x256xf32>,
    %c1_i32_30 = arith.constant 1 : i32
    %67 = tpu.dynamic_rotate %51 by %c1_i32_30 dim 1 : vector<8x256xf32>, i32 -> vector<8x256xf32>
    %68 = vector.extract_strided_slice %0 {offsets = [3, 0], sizes = [1, 256], strides = [1, 1]} : vector<9x256xf32> to vector<1x256xf32>
    %69 = vector.broadcast %68 : vector<1x256xf32> to vector<8x256xf32>
    %70 = arith.mulf %67, %69 : vector<8x256xf32>
    %c24_31 = arith.constant 24 : index
    %c0_32 = arith.constant 0 : index
    %71 = vector.load %arg9[%c24_31, %c0_32] : memref<72x256xf32, #tpu.memory_space<vmem>>, vector<8x256xf32>
    tpu.vector_store %arg9[%c24_31, %c0_32], %70 {strides = array<i32>} : memref<72x256xf32, #tpu.memory_space<vmem>>, vector<8x256xf32>,
    %c32_33 = arith.constant 32 : index
    %c0_34 = arith.constant 0 : index
    %72 = vector.load %arg9[%c32_33, %c0_34] : memref<72x256xf32, #tpu.memory_space<vmem>>, vector<8x256xf32>
    tpu.vector_store %arg9[%c32_33, %c0_34], %51 {strides = array<i32>} : memref<72x256xf32, #tpu.memory_space<vmem>>, vector<8x256xf32>,
    %c255_i32_35 = arith.constant 255 : i32
    %73 = tpu.dynamic_rotate %51 by %c255_i32_35 dim 1 : vector<8x256xf32>, i32 -> vector<8x256xf32>
    %74 = vector.extract_strided_slice %0 {offsets = [5, 0], sizes = [1, 256], strides = [1, 1]} : vector<9x256xf32> to vector<1x256xf32>
    %75 = vector.broadcast %74 : vector<1x256xf32> to vector<8x256xf32>
    %76 = arith.mulf %73, %75 : vector<8x256xf32>
    %c40 = arith.constant 40 : index
    %c0_36 = arith.constant 0 : index
    %77 = vector.load %arg9[%c40, %c0_36] : memref<72x256xf32, #tpu.memory_space<vmem>>, vector<8x256xf32>
    tpu.vector_store %arg9[%c40, %c0_36], %76 {strides = array<i32>} : memref<72x256xf32, #tpu.memory_space<vmem>>, vector<8x256xf32>,
    %c241_i32_37 = arith.constant 241 : i32
    %78 = tpu.dynamic_rotate %51 by %c241_i32_37 dim 1 : vector<8x256xf32>, i32 -> vector<8x256xf32>
    %79 = vector.extract_strided_slice %0 {offsets = [6, 0], sizes = [1, 256], strides = [1, 1]} : vector<9x256xf32> to vector<1x256xf32>
    %80 = vector.broadcast %79 : vector<1x256xf32> to vector<8x256xf32>
    %81 = arith.mulf %78, %80 : vector<8x256xf32>
    %c48 = arith.constant 48 : index
    %c0_38 = arith.constant 0 : index
    %82 = vector.load %arg9[%c48, %c0_38] : memref<72x256xf32, #tpu.memory_space<vmem>>, vector<8x256xf32>
    tpu.vector_store %arg9[%c48, %c0_38], %81 {strides = array<i32>} : memref<72x256xf32, #tpu.memory_space<vmem>>, vector<8x256xf32>,
    %c240_i32_39 = arith.constant 240 : i32
    %83 = tpu.dynamic_rotate %51 by %c240_i32_39 dim 1 : vector<8x256xf32>, i32 -> vector<8x256xf32>
    %84 = vector.extract_strided_slice %0 {offsets = [7, 0], sizes = [1, 256], strides = [1, 1]} : vector<9x256xf32> to vector<1x256xf32>
    %85 = vector.broadcast %84 : vector<1x256xf32> to vector<8x256xf32>
    %86 = arith.mulf %83, %85 : vector<8x256xf32>
    %c56 = arith.constant 56 : index
    %c0_40 = arith.constant 0 : index
    %87 = vector.load %arg9[%c56, %c0_40] : memref<72x256xf32, #tpu.memory_space<vmem>>, vector<8x256xf32>
    tpu.vector_store %arg9[%c56, %c0_40], %86 {strides = array<i32>} : memref<72x256xf32, #tpu.memory_space<vmem>>, vector<8x256xf32>,
    %c239_i32_41 = arith.constant 239 : i32
    %88 = tpu.dynamic_rotate %51 by %c239_i32_41 dim 1 : vector<8x256xf32>, i32 -> vector<8x256xf32>
    %89 = vector.extract_strided_slice %0 {offsets = [8, 0], sizes = [1, 256], strides = [1, 1]} : vector<9x256xf32> to vector<1x256xf32>
    %90 = vector.broadcast %89 : vector<1x256xf32> to vector<8x256xf32>
    %91 = arith.mulf %88, %90 : vector<8x256xf32>
    %c64 = arith.constant 64 : index
    %c0_42 = arith.constant 0 : index
    %92 = vector.load %arg9[%c64, %c0_42] : memref<72x256xf32, #tpu.memory_space<vmem>>, vector<8x256xf32>
    tpu.vector_store %arg9[%c64, %c0_42], %91 {strides = array<i32>} : memref<72x256xf32, #tpu.memory_space<vmem>>, vector<8x256xf32>,
    %c0_43 = arith.constant 0 : index
    %c0_44 = arith.constant 0 : index
    %93 = vector.load %arg5[%c0_43, %c0_44] : memref<8x72xf32, #tpu.memory_space<vmem>>, vector<8x72xf32>
    %c0_45 = arith.constant 0 : index
    %c0_46 = arith.constant 0 : index
    %94 = vector.load %arg9[%c0_45, %c0_46] : memref<72x256xf32, #tpu.memory_space<vmem>>, vector<72x256xf32>
    %cst_47 = arith.constant dense<0.000000e+00> : vector<8x256xf32>
    %95 = tpu.matmul %93, %94, %cst_47 {dimension_numbers = #tpu.dot_dimension_numbers<[1], [0], [0], [1], [0, 0, 1, 1], [], []>} : vector<8x72xf32>, vector<72x256xf32>, vector<8x256xf32> -> vector<8x256xf32>
    %c0_48 = arith.constant 0 : index
    %c0_49 = arith.constant 0 : index
    %96 = vector.load %arg6[%c0_48, %c0_49] : memref<8x1xf32, #tpu.memory_space<vmem>>, vector<8x1xf32>
    %97 = vector.broadcast %96 : vector<8x1xf32> to vector<8x256xf32>
    %98 = arith.addf %95, %97 : vector<8x256xf32>
    %cst_50 = arith.constant 0.000000e+00 : f32
    %99 = vector.broadcast %cst_50 : f32 to vector<8x256xf32>
    %100 = arith.maximumf %98, %99 : vector<8x256xf32>
    %c0_51 = arith.constant 0 : index
    %c0_52 = arith.constant 0 : index
    %c0_53 = arith.constant 0 : index
    %101 = vector.load %arg7[%c0_51, %c0_52, %c0_53] : memref<1x8x256xf32, #tpu.memory_space<vmem>>, vector<1x8x256xf32>
    %102 = vector.shape_cast %101 : vector<1x8x256xf32> to vector<8x256xf32>
    %103 = vector.shape_cast %100 : vector<8x256xf32> to vector<1x8x256xf32>
    tpu.vector_store %arg7[%c0_51, %c0_52, %c0_53], %103 {strides = array<i32>} : memref<1x8x256xf32, #tpu.memory_space<vmem>>, vector<1x8x256xf32>,
    return
  }
  func.func @transform_0(%arg0: i32) -> (i32, i32, i32) {
    %c0_i32 = arith.constant 0 : i32
    %c0_i32_0 = arith.constant 0 : i32
    %c0_i32_1 = arith.constant 0 : i32
    return %arg0, %c0_i32, %c0_i32_0 : i32, i32, i32
  }
  func.func @transform_1(%arg0: i32) -> (i32, i32) {
    %c0_i32 = arith.constant 0 : i32
    %c0_i32_0 = arith.constant 0 : i32
    %c0_i32_1 = arith.constant 0 : i32
    return %c0_i32, %c0_i32_0 : i32, i32
  }
  func.func @transform_2(%arg0: i32) -> (i32, i32) {
    %c0_i32 = arith.constant 0 : i32
    %c0_i32_0 = arith.constant 0 : i32
    %c0_i32_1 = arith.constant 0 : i32
    return %c0_i32, %c0_i32_0 : i32, i32
  }
  func.func @transform_3(%arg0: i32) -> (i32, i32) {
    %c0_i32 = arith.constant 0 : i32
    %c0_i32_0 = arith.constant 0 : i32
    %c0_i32_1 = arith.constant 0 : i32
    return %c0_i32, %c0_i32_0 : i32, i32
  }
  func.func @transform_4(%arg0: i32) -> (i32, i32) {
    %c0_i32 = arith.constant 0 : i32
    %c0_i32_0 = arith.constant 0 : i32
    %c0_i32_1 = arith.constant 0 : i32
    return %c0_i32, %c0_i32_0 : i32, i32
  }
  func.func @transform_5(%arg0: i32) -> (i32, i32) {
    %c0_i32 = arith.constant 0 : i32
    %c0_i32_0 = arith.constant 0 : i32
    %c0_i32_1 = arith.constant 0 : i32
    return %c0_i32, %c0_i32_0 : i32, i32
  }
  func.func @transform_6(%arg0: i32) -> (i32, i32, i32) {
    %c0_i32 = arith.constant 0 : i32
    %c0_i32_0 = arith.constant 0 : i32
    %c0_i32_1 = arith.constant 0 : i32
    return %arg0, %c0_i32, %c0_i32_0 : i32, i32, i32
  }
}

</mosaic_0001>

<bundles_post_ra>
// kernel: tpu_custom_call.1
= control target key start
LH: loop header
LB: loop body
LE: loop exit
PB: predicated region body
PF: predicated region fallthrough
CT: control target
= control target key end

     0   :  { %11 = vsyncpa [#allocation5], 0  ;;  %s1436_s0 = inlined_call_operand.vmem [shape: f32[2,4,256], index: 0, kind: input, shape index: {}]   ;;  %s1437_s1 = inlined_call_operand.hbm [shape: f32[9,256], index: 1, kind: input, shape index: {}]   ;;  %s1438_s2 = inlined_call_operand.vmem [shape: f32[8,36], index: 2, kind: input, shape index: {}]   ;;  %s1439_s3 = inlined_call_operand.vmem [shape: f32[8,1], index: 3, kind: input, shape index: {}]   ;;  %s1440_s4 = inlined_call_operand.vmem [shape: f32[8,72], index: 4, kind: input, shape index: {}]   ;;  %s1441_s5 = inlined_call_operand.vmem [shape: f32[8,1], index: 5, kind: input, shape index: {}]   ;;  %s1442_s6 = inlined_call_operand.hbm [shape: f32[2,8,256], index: 6, kind: output, shape index: {}]  }
   0x1   :  { %12 = vsyncpa [#allocation6], 0 }
   0x2   :  { %14 = vsyncpa [#allocation6 + $0x1], 0  ;;  %s1081_s21 = smov 0   ;;  %s1083_s22 = smov 0  }
   0x3   :  { %s1085_s23 = smov 0   ;;  %s1087_s24 = smov 0  }
   0x4 LB: > { %s1102_s25 = sadd.s32 4294967295, %s1030_s24   ;;  %s826_s26 = sadd.s32 4294967294, %s1030_s24   ;;  %s1030_s24 = sphi %s1087_s24, %s1458_s24   ;;  %s1026_s23 = sphi %s1085_s23, %s1457_s23   ;;  %s1022_s22 = sphi %s1083_s22, %s1456_s22   ;;  %s1018_s21 = sphi %s1081_s21, %s1455_s21  }
   0x5   : > { %s1106_s27 = sadd.s32 1, %s1030_s24   ;;  %s158_s28 = sadd.s32 1, %s1026_s23 }
   0x6   : > { %s155_s29 = ssub.s32 %s1030_s24, %s1106_s27  ;;  %p168_p0 = scmp.ne.s32.totalorder %s1026_s23, %s1022_s22 }
   0x7   : > { %p156_p1 = scmp.eq.s32.totalorder %s155_s29, 0  ;;  %p169_p2 = scmp.eq.s32.totalorder %s1102_s25, 1 }
   0x8   : > { %p174_p3 = scmp.ne.s32.totalorder %s1022_s22, %s1018_s21  ;;  %p175_p4 = scmp.eq.s32.totalorder %s826_s26, 1 }
   0x9   : > { %s1117_s30 = scalar_select %p156_p1, %s1026_s23, %s158_s28  }
   0xa   : > { %p1119_p5 = por %p169_p2, %p168_p0  ;;  %p1123_p6 = por %p175_p4, %p174_p3 }
   0xb   : > { %p827_p7 = scmp.ge.s32.totalorder %s1030_s24, 1  ;;  %p182_p8 = scmp.lt.s32.totalorder %s1030_s24, 3 }
   0xc   : > { %s1446_s7 = scalar_select %p1119_p5, 1, 0 }
   0xd   : > { %s1447_s8 = scalar_select %p1123_p6, 1, 0 }
   0xe   : > { %p1443_p9 = scmp.eq.s32.totalorder %s1102_s25, 0  ;;  %p1130_p10 = pnand %p827_p7, %p182_p8 }
   0xf   : > { %s1032_s10 = smov [#allocation4]   ;;  %s936_s15 = scalar_lea.hbm %s1437_s1, 512 }
  0x10   : > { %s1448_s9 = scalar_select %p1130_p10, 1, 0 }
  0x11   : > { %s194_s11 = sshll.u32 %s1032_s10, 4  ;;  %p878_p11 = pneg %p1130_p10  ;;  %s195_s11 = int_to_ptr.vmem [resolvable:$true] %s194_s11 }
  0x12   : > { %p937_p13 = scmp.ne.s32.totalorder %s1437_s1, %s936_s15  ;;  %p943_p3 = scmp.lt.u32.totalorder %s936_s15, %s1437_s1 }
  0x13   : > { %p1138_p12 = pnand %p1443_p9, %p878_p11 }
  0x15   : > { %p938_p0 = pneg %p1138_p12 }
  0x17   : > { %p939_p1 = pnand %p938_p0, %p937_p13 }
  0x19   : > { %p940_p2 = pneg %p939_p1 }
  0x1b   : > { %p945_p4 = pnand %p943_p3, %p940_p2 }
  0x1d   : > { %948 = shalt.err (!%p945_p4)
}
  0x1e   : > { %s949_s20 = scalar_lea.vmem %s195_s11, 512  ;;  %p957_p9 = scmp.lt.s32.totalorder %s195_s11, %s195_s11 }
  0x1f   : > { %p950_p7 = scmp.ne.s32.totalorder %s195_s11, %s949_s20  ;;  %p958_p6 = scmp.lt.s32.totalorder %s949_s20, %s949_s20 }
  0x21   : > { %p952_p8 = pnand %p950_p7, %p938_p0  ;;  %p959_p5 = por %p958_p6, %p957_p9 }
  0x23   : > { %p953_p11 = pneg %p952_p8 }
  0x25   : > { %p960_p10 = pnand %p959_p5, %p953_p11 }
  0x27   : > { %963 = shalt.err (!%p960_p10)
}
  0x28   : > { %s1033_s26 = smov 256   ;;  %s1034_s28 = smov 16  }
  0x29   : > { %881 = dma.hbm_to_vmem [thread:$0]  (!%p1138_p12), %s1437_s1, 512, %s195_s11, [#allocation5], %s1033_s26, %s1033_s26, %s1034_s28  }
  0x2a   : > { %p1450_p13 = scmp.ne.s32.totalorder %s1448_s9, 0 }
  0x2b   : > { %p1451_p1 = scmp.eq.s32.totalorder (!%p1450_p13), %s1102_s25, 0 }
  0x2c   : > { %230 = sbr.rel (%p1450_p13) target bundleno = 818 (0x332), region = 44 }
  0x33   : > { %1009 = dma.done.wait (%p1451_p1), [#allocation5], 512   ;;  %p1452_p0 = pmov %p1451_p1 }
  0x34   : > { %p260_p5 = scmp.lt.s32.totalorder %s1102_s25, 1  ;;  %s1035_s11 = smov 1   ;;  %v1043_v2 = vmov 0.0   ;;  %v464_v3 = vld [vmem:[%s1439_s3] sm:$0xff]  ;;  %v1044_v4 = vmov 0   ;;  %v277_v5 = vlaneseq  ;;  %v1193_v9 = vld [vmem:[#allocation4] sm:$0xff] }
  0x35   : > { %1011 = vsyncadd (%p1452_p0), [#allocation5], 4294966784  ;;  %s1036_s9 = smov 16   ;;  %s1037_s17 = smov 17   ;;  %545 = vmatprep.mubr.f32.mxu0 %v1043_v2  ;;  %729 = vmatprep.mubr.f32.mxu1 %v1043_v2  ;;  %v1195_v10 = vld [vmem:[#allocation4 + $0x8] sm:$0xff]  ;;  %vm474_vm8 = vcmask 1043456  }
  0x36   : > { %s261_s13 = scalar_select %p260_p5, %s1102_s25, 1  ;;  %934 = vset.pattern.permute.xlu0 %v1044_v4  ;;  %v1188_v6 = vshrl.u32 %v277_v5, 7  ;;  %v1190_v7 = vand.u32 127, %v277_v5  ;;  %vm470_vm9 = vcmask 293888   ;;  %vm661_vm10 = vcmask 588800  }
  0x37   : > { %s1038_s18 = smov 15   ;;  %s1039_s19 = smov 127  }
  0x38   : > { %s846_s14 = sshll.u32 %s261_s13, 3  ;;  %s1040_s20 = smov 112   ;;  %v347_v8 = vsub.s32 3, %v1188_v6  ;;  %v284_v13 = vsub.s32 0, %v1188_v6  ;;  %vm342_vm0 = vcmp.lt.s32.totalorder %v1190_v7, 1  ;;  %v303_v16 = vsub.s32 1, %v1188_v6 }
  0x39   : > { %s264_s16 = scalar_lea.vmem %s1436_s0, %s846_s14  ;;  %s1041_s26 = smov 113   ;;  %vm279_vm1 = vcmp.lt.s32.totalorder %v1190_v7, 17  ;;  %vm298_vm2 = vcmp.lt.s32.totalorder %v1190_v7, 16  ;;  %v328_v19 = vsub.s32 2, %v1188_v6  ;;  %vm323_vm3 = vcmp.lt.s32.totalorder %v1190_v7, 15 }
  0x3a   : > { %v269_v0 = vld [vmem:[%s264_s16] sm:$0xff]  ;;  %s1042_s28 = smov 111   ;;  %v1200_v14 = vrot.slane %v1193_v9, %v347_v8  ;;  %v1203_v15 = vrot.slane %v1195_v10, %v347_v8  ;;  %v1214_v22 = vrot.slane %v1193_v9, %v284_v13  ;;  %v1217_v23 = vrot.slane %v1195_v10, %v284_v13  ;;  %p1453_p9 = scmp.ne.s32.totalorder %s1446_s7, 0 }
  0x3b   : > { %338 = vrot.lane.b32.xlu1 %v269_v0, %s1035_s11  ;;  %363 = vst [vmem:[#allocation2 + $0x20] sm:$0xf] %v269_v0  ;;  %294 = vrot.lane.b32.xlu0 %v269_v0, %s1036_s9  ;;  %v271_v1 = vcombine.high %v269_v0, %v269_v0  ;;  %v1222_v26 = vrot.slane %v1193_v9, %v303_v16  ;;  %v374_v28 = vsub.s32 5, %v1188_v6  ;;  %vm369_vm4 = vcmp.lt.s32.totalorder %v1190_v7, 127 }
  0x3c   : > { %v1225_v27 = vrot.slane %v1195_v10, %v303_v16  ;;  %v1230_v33 = vrot.slane %v1193_v9, %v328_v19  ;;  %v1233_v34 = vrot.slane %v1195_v10, %v328_v19  ;;  %v418_v49 = vsub.s32 7, %v1188_v6 }
  0x3d   : > { %364 = vst [vmem:[#allocation2 + $0x28] sm:$0xf] %v271_v1  ;;  %v1256_v52 = vrot.slane %v1193_v9, %v374_v28  ;;  %v1259_v53 = vrot.slane %v1195_v10, %v374_v28  ;;  %vm413_vm5 = vcmp.lt.s32.totalorder %v1190_v7, 112  ;;  %v399_v62 = vsub.s32 6, %v1188_v6 }
  0x3e   : > { %v1267_v58 = vrot.slane %v1193_v9, %v418_v49  ;;  %v1272_v61 = vrot.slane %v1195_v10, %v418_v49  ;;  %vm394_vm6 = vcmp.lt.s32.totalorder %v1190_v7, 113  ;;  %vm438_vm7 = vcmp.lt.s32.totalorder %v1190_v7, 111 }
  0x3f   : > { %273 = vrot.lane.b32.xlu0 %v269_v0, %s1037_s17  ;;  %340 = vrot.lane.b32.xlu1 %v271_v1, %s1035_s11  ;;  %v1283_v6 = vrot.slane %v1193_v9, %v399_v62 }
  0x43   : > { %275 = vrot.lane.b32.xlu1 %v271_v1, %s1037_s17  ;;  %296 = vrot.lane.b32.xlu0 %v271_v1, %s1036_s9 }
  0x47   : > { %321 = vrot.lane.b32.xlu1 %v271_v1, %s1038_s18  ;;  %319 = vrot.lane.b32.xlu0 %v269_v0, %s1038_s18 }
  0x4b   : > { %367 = vrot.lane.b32.xlu1 %v271_v1, %s1039_s19  ;;  %365 = vrot.lane.b32.xlu0 %v269_v0, %s1039_s19 }
  0x4f   : > { %411 = vrot.lane.b32.xlu1 %v271_v1, %s1040_s20  ;;  %409 = vrot.lane.b32.xlu0 %v269_v0, %s1040_s20 }
  0x53   : > { %392 = vrot.lane.b32.xlu1 %v271_v1, %s1041_s26  ;;  %390 = vrot.lane.b32.xlu0 %v269_v0, %s1041_s26 }
  0x57   : > { %436 = vrot.lane.b32.xlu1 %v271_v1, %s1042_s28  ;;  %434 = vrot.lane.b32.xlu0 %v269_v0, %s1042_s28 }
  0x5b   : > { %467 = vperm.xlu0 %934, %v464_v3  }
  0xad   : > { %v339_v11 = vpop.permute.xlu1 %338  ;;  %v295_v12 = vpop.permute.xlu0 %294 }
  0xb1   : > { %v274_v17 = vpop.permute.xlu0 %273  ;;  %v341_v18 = vpop.permute.xlu1 %340 }
  0xb2   : > { %v343_v20 = vsel %vm342_vm0, %v339_v11, %v341_v18  ;;  %v344_v21 = vsel %vm342_vm0, %v341_v18, %v339_v11  ;;  %v1286_v11 = vrot.slane %v1195_v10, %v399_v62 }
  0xb3   : > { %v353_v24 = vmul.f32 %v1200_v14, %v344_v21  ;;  %v354_v25 = vmul.f32 %v1203_v15, %v343_v20 }
  0xb5   : > { %v357_v29 = vrot.slane %v353_v24, 4  ;;  %v358_v30 = vrot.slane %v354_v25, 4  ;;  %v276_v31 = vpop.permute.xlu1 %275  ;;  %v297_v32 = vpop.permute.xlu0 %296 }
  0xb6   : > { %v280_v35 = vsel %vm279_vm1, %v274_v17, %v276_v31  ;;  %v281_v36 = vsel %vm279_vm1, %v276_v31, %v274_v17  ;;  %v299_v37 = vsel %vm298_vm2, %v295_v12, %v297_v32  ;;  %v300_v38 = vsel %vm298_vm2, %v297_v32, %v295_v12  ;;  %v1297_v31 = vld [vmem:[#allocation4 + $0x18] ss:$0 sm:$0xff] }
  0xb7   : > { %361 = vst [vmem:[#allocation2 + $0x10] sm:$0xf0] %v357_v29  ;;  %362 = vst [vmem:[#allocation2 + $0x18] sm:$0xf0] %v358_v30  ;;  %v290_v39 = vmul.f32 %v1214_v22, %v281_v36  ;;  %v291_v40 = vmul.f32 %v1217_v23, %v280_v35  ;;  %v309_v41 = vmul.f32 %v1222_v26, %v300_v38  ;;  %v1295_v30 = vld [vmem:[#allocation4 + $0x10] ss:$0 sm:$0xff] }
  0xb8   : > { %v310_v42 = vmul.f32 %v1225_v27, %v299_v37 }
  0xb9   : > { %292 = vst [vmem:[#allocation2] sm:$0xf] %v290_v39  ;;  %293 = vst [vmem:[#allocation2 + $0x8] sm:$0xf] %v291_v40  ;;  %v313_v43 = vrot.slane %v309_v41, 4  ;;  %v322_v45 = vpop.permute.xlu1 %321  ;;  %v320_v46 = vpop.permute.xlu0 %319 }
  0xba   : > { %v314_v44 = vrot.slane %v310_v42, 4  ;;  %v324_v47 = vsel %vm323_vm3, %v320_v46, %v322_v45  ;;  %v325_v48 = vsel %vm323_vm3, %v322_v45, %v320_v46 }
  0xbb   : > { %317 = vst [vmem:[#allocation2] sm:$0xf0] %v313_v43  ;;  %v334_v50 = vmul.f32 %v1230_v33, %v325_v48  ;;  %v335_v51 = vmul.f32 %v1233_v34, %v324_v47  ;;  %v453_v48 = vld [vmem:[%s1438_s2] sm:$0xff] }
  0xbc   : > { %318 = vst [vmem:[#allocation2 + $0x8] sm:$0xf0] %v314_v44 }
  0xbd   : > { %336 = vst [vmem:[#allocation2 + $0x10] sm:$0xf] %v334_v50  ;;  %337 = vst [vmem:[#allocation2 + $0x18] sm:$0xf] %v335_v51  ;;  %v368_v54 = vpop.permute.xlu1 %367  ;;  %v366_v55 = vpop.permute.xlu0 %365 }
  0xbe   : > { %v370_v56 = vsel %vm369_vm4, %v366_v55, %v368_v54  ;;  %v371_v57 = vsel %vm369_vm4, %v368_v54, %v366_v55 }
  0xbf   : > { %v380_v59 = vmul.f32 %v1256_v52, %v370_v56  ;;  %v381_v60 = vmul.f32 %v1259_v53, %v371_v57 }
  0xc1   : > { %v384_v63 = vrot.slane %v380_v59, 4  ;;  %v385_v0 = vrot.slane %v381_v60, 4  ;;  %v412_v1 = vpop.permute.xlu1 %411  ;;  %v410_v2 = vpop.permute.xlu0 %409  ;;  %v655_v59 = vld [vmem:[%s1441_s5] sm:$0xff] }
  0xc2   : > { %v414_v3 = vsel %vm413_vm5, %v410_v2, %v412_v1  ;;  %v415_v4 = vsel %vm413_vm5, %v412_v1, %v410_v2  ;;  %v454_v16 = vld [vmem:[#allocation2] sm:$0xff] }
  0xc3   : > { %388 = vst [vmem:[#allocation2 + $0x20] sm:$0xf0] %v384_v63  ;;  %389 = vst [vmem:[#allocation2 + $0x28] sm:$0xf0] %v385_v0  ;;  %v424_v5 = vmul.f32 %v1267_v58, %v414_v3  ;;  %v425_v8 = vmul.f32 %v1272_v61, %v415_v4  ;;  %v455_v12 = vld [vmem:[#allocation2 + $0x8] sm:$0xff] }
  0xc4   : > { %v457_v13 = vld [vmem:[#allocation2 + $0x18] sm:$0xff]  ;;  %v456_v17 = vld [vmem:[#allocation2 + $0x10] sm:$0xff] }
  0xc5   : > { %v428_v18 = vrot.slane %v424_v5, 4  ;;  %v429_v19 = vrot.slane %v425_v8, 4  ;;  %v393_v20 = vpop.permute.xlu1 %392  ;;  %v391_v21 = vpop.permute.xlu0 %390  ;;  %v848_v24 = vpack.c.bf16 %v457_v13, %v455_v12  ;;  %v850_v25 = vpack.c.bf16 %v456_v17, %v454_v16 }
  0xc6   : > { %v395_v28 = vsel %vm394_vm6, %v391_v21, %v393_v20  ;;  %v396_v9 = vsel %vm394_vm6, %v393_v20, %v391_v21 }
  0xc7   : > { %432 = vst [vmem:[#allocation2 + $0x30] sm:$0xf0] %v428_v18  ;;  %433 = vst [vmem:[#allocation2 + $0x38] sm:$0xf0] %v429_v19  ;;  %v405_v10 = vmul.f32 %v1283_v6, %v395_v28  ;;  %v406_v29 = vmul.f32 %v1286_v11, %v396_v9  ;;  %849 = vmatprep.subr.bf16.mxu0 %v848_v24 }
  0xc8   : > { %851 = vmatpush1.bf16.msra.mxu0 %v850_v25 }
  0xc9   : > { %407 = vst [vmem:[#allocation2 + $0x30] sm:$0xf] %v405_v10  ;;  %408 = vst [vmem:[#allocation2 + $0x38] sm:$0xf] %v406_v29  ;;  %v437_v32 = vpop.permute.xlu1 %436  ;;  %v435_v35 = vpop.permute.xlu0 %434 }
  0xca   : > { %v439_v36 = vsel %vm438_vm7, %v435_v35, %v437_v32  ;;  %v440_v37 = vsel %vm438_vm7, %v437_v32, %v435_v35  ;;  %v459_v40 = vld [vmem:[#allocation2 + $0x28] sm:$0xff]  ;;  %v458_v42 = vld [vmem:[#allocation2 + $0x20] sm:$0xff] }
  0xcb   : > { %v449_v38 = vmul.f32 %v1295_v30, %v439_v36  ;;  %v450_v39 = vmul.f32 %v1297_v31, %v440_v37 }
  0xcd   : > { %451 = vst [vmem:[#allocation2 + $0x40] sm:$0xf] %v449_v38  ;;  %452 = vst [vmem:[#allocation2 + $0x48] sm:$0xf] %v450_v39 }
  0xd0   : > { %v461_v41 = vld [vmem:[#allocation2 + $0x38] sm:$0xff]  ;;  %v460_v43 = vld [vmem:[#allocation2 + $0x30] sm:$0xff] }
  0xd1   : > { %v852_v44 = vpack.c.bf16 %v461_v41, %v459_v40  ;;  %v854_v45 = vpack.c.bf16 %v460_v43, %v458_v42 }
  0xd3   : > { %853 = vmatprep.subr.bf16.mxu0 %v852_v44 }
  0xd4   : > { %855 = vmatpush1.bf16.msra.mxu0 %v854_v45  ;;  %v463_v46 = vld [vmem:[#allocation2 + $0x48] sm:$0xf]  ;;  %v462_v47 = vld [vmem:[#allocation2 + $0x40] sm:$0xf] }
  0xd5   : > { %837 = vmatprep.subr.msk.mxu0 %vm474_vm8, %v463_v46 }
  0xd8   : > { %838 = vmatpush1.msk.msra.mxu0 %vm474_vm8, %v462_v47 }
  0xd9   : > { %839 = vmatmul.mubr.msk.f32.vlgmr.msra.gmra.mrb[0].mxu0 %vm470_vm9, %v453_v48 }
  0xda   : > { %v468_v49 = vpop.permute.xlu0 %467 }
 0x1ac   : > { %v547_v50 = vpop.f32.mrb[0].mxu0 }
 0x1ad   : > { %v548_v51 = vadd.f32 %v547_v50, %v468_v49  ;;  %v549_v54 = vpop.f32.mrb[1].mxu0 }
 0x1ae   : > { %v550_v56 = vadd.f32 %v549_v54, %v468_v49 }
 0x1af   : > { %v1308_v55 = vmax.f32 %v548_v51, 0.0 }
 0x1b0   : > { %v553_v57 = vmax.f32 %v550_v56, 0.0 }
 0x1b1   : > { %564 = vrot.lane.b32.xlu0 %v1308_v55, %s1036_s9  ;;  %554 = vrot.lane.b32.xlu1 %v1308_v55, %s1037_s17 }
 0x1b5   : > { %574 = vrot.lane.b32.xlu0 %v1308_v55, %s1038_s18  ;;  %556 = vrot.lane.b32.xlu1 %v553_v57, %s1037_s17 }
 0x1b9   : > { %584 = vrot.lane.b32.xlu0 %v1308_v55, %s1035_s11  ;;  %566 = vrot.lane.b32.xlu1 %v553_v57, %s1036_s9  ;;  %s257_s9 = sand.u32 1, %s1022_s22  }
 0x1ba   : > { %s832_s17 = sshll.u32 %s257_s9, 4  ;;  %s741_s10 = scalar_lea.sflag [#allocation6], %s257_s9 }
 0x1bd   : > { %596 = vrot.lane.b32.xlu0 %v1308_v55, %s1039_s19  ;;  %576 = vrot.lane.b32.xlu1 %v553_v57, %s1038_s18  ;;  %s847_s18 = sshll.u32 %s1102_s25, 8  ;;  %s1045_s25 = smov [#allocation7]  }
 0x1be   : > { %s1394_s29 = scalar_lea.hbm %s1442_s6, %s847_s18  ;;  %s968_s14 = sshll.u32 %s1045_s25, 4  ;;  %s969_s14 = int_to_ptr.vmem [resolvable:$false] %s968_s14 }
 0x1bf   : > { %s970_s15 = scalar_lea.vmem %s969_s14, 512 }
 0x1c1   : > { %606 = vrot.lane.b32.xlu0 %v1308_v55, %s1041_s26  ;;  %586 = vrot.lane.b32.xlu1 %v553_v57, %s1035_s11 }
 0x1c5   : > { %616 = vrot.lane.b32.xlu0 %v1308_v55, %s1040_s20  ;;  %598 = vrot.lane.b32.xlu1 %v553_v57, %s1039_s19  ;;  %s259_s19 = scalar_lea.vmem [#allocation7], %s832_s17 }
 0x1c9   : > { %626 = vrot.lane.b32.xlu0 %v1308_v55, %s1042_s28  ;;  %608 = vrot.lane.b32.xlu1 %v553_v57, %s1041_s26 }
 0x1cd   : > { %658 = vperm.xlu0 %934, %v655_v59   ;;  %618 = vrot.lane.b32.xlu1 %v553_v57, %s1040_s20  ;;  %s755_s20 = sshll.u32 %s259_s19, 4  ;;  %s1396_s20 = int_to_ptr.vmem [resolvable:$true] %s755_s20 }
 0x1ce   : > { %s964_s13 = scalar_lea.vmem %s1396_s20, 256  ;;  %p971_p2 = scmp.lt.s32.totalorder %s1396_s20, %s969_s14 }
 0x1cf   : > { %p965_p6 = scmp.ne.s32.totalorder %s1396_s20, %s964_s13  ;;  %p972_p3 = scmp.lt.s32.totalorder %s970_s15, %s964_s13 }
 0x1d1   : > { %628 = vrot.lane.b32.xlu1 %v553_v57, %s1042_s28  ;;  %p966_p10 = pnand %p965_p6, %p1453_p9  ;;  %p973_p4 = por %p972_p3, %p971_p2 }
 0x1d3   : > { %p967_p12 = pneg %p966_p10 }
 0x1d5   : > { %p974_p7 = pnand %p973_p4, %p967_p12 }
 0x223   : > { %v565_v60 = vpop.permute.xlu0 %564  ;;  %v555_v62 = vpop.permute.xlu1 %554 }
 0x227   : > { %v575_v63 = vpop.permute.xlu0 %574  ;;  %v557_v0 = vpop.permute.xlu1 %556 }
 0x228   : > { %v558_v1 = vsel %vm279_vm1, %v555_v62, %v557_v0  ;;  %v559_v2 = vsel %vm279_vm1, %v557_v0, %v555_v62 }
 0x229   : > { %v560_v12 = vmul.f32 %v559_v2, %v1214_v22  ;;  %v561_v16 = vmul.f32 %v558_v1, %v1217_v23 }
 0x22b   : > { %v585_v3 = vpop.permute.xlu0 %584  ;;  %v567_v4 = vpop.permute.xlu1 %566 }
 0x22c   : > { %v568_v5 = vsel %vm298_vm2, %v565_v60, %v567_v4  ;;  %v569_v8 = vsel %vm298_vm2, %v567_v4, %v565_v60 }
 0x22d   : > { %v570_v13 = vmul.f32 %v569_v8, %v1222_v26  ;;  %v571_v17 = vmul.f32 %v568_v5, %v1225_v27 }
 0x22f   : > { %v577_v18 = vpop.permute.xlu1 %576  ;;  %v856_v19 = vpack.c.bf16 %v571_v17, %v561_v16  ;;  %v858_v20 = vpack.c.bf16 %v570_v13, %v560_v12  ;;  %v597_v21 = vpop.permute.xlu0 %596 }
 0x230   : > { %v578_v24 = vsel %vm323_vm3, %v575_v63, %v577_v18  ;;  %v579_v25 = vsel %vm323_vm3, %v577_v18, %v575_v63 }
 0x231   : > { %857 = vmatprep.subr.bf16.mxu1 %v856_v19  ;;  %v580_v26 = vmul.f32 %v579_v25, %v1230_v33  ;;  %v581_v27 = vmul.f32 %v578_v24, %v1233_v34 }
 0x232   : > { %859 = vmatpush1.bf16.msra.mxu1 %v858_v20 }
 0x233   : > { %v587_v28 = vpop.permute.xlu1 %586  ;;  %v607_v29 = vpop.permute.xlu0 %606 }
 0x234   : > { %v588_v22 = vsel %vm342_vm0, %v585_v3, %v587_v28  ;;  %v589_v23 = vsel %vm342_vm0, %v587_v28, %v585_v3 }
 0x235   : > { %v590_v9 = vmul.f32 %v589_v23, %v1200_v14  ;;  %v591_v10 = vmul.f32 %v588_v22, %v1203_v15 }
 0x237   : > { %v599_v32 = vpop.permute.xlu1 %598  ;;  %v860_v35 = vpack.c.bf16 %v591_v10, %v581_v27  ;;  %v862_v36 = vpack.c.bf16 %v590_v9, %v580_v26  ;;  %v617_v40 = vpop.permute.xlu0 %616 }
 0x238   : > { %v600_v37 = vsel %vm369_vm4, %v597_v21, %v599_v32  ;;  %v601_v38 = vsel %vm369_vm4, %v599_v32, %v597_v21 }
 0x239   : > { %v602_v39 = vmul.f32 %v600_v37, %v1256_v52  ;;  %v603_v33 = vmul.f32 %v601_v38, %v1259_v53  ;;  %861 = vmatprep.subr.bf16.mxu1 %v860_v35 }
 0x23a   : > { %863 = vmatpush1.bf16.msra.mxu1 %v862_v36 }
 0x23b   : > { %v609_v34 = vpop.permute.xlu1 %608  ;;  %v864_v14 = vpack.c.bf16 %v603_v33, %v553_v57  ;;  %v866_v15 = vpack.c.bf16 %v602_v39, %v1308_v55  ;;  %v627_v48 = vpop.permute.xlu0 %626 }
 0x23c   : > { %v610_v41 = vsel %vm394_vm6, %v607_v29, %v609_v34  ;;  %v611_v42 = vsel %vm394_vm6, %v609_v34, %v607_v29 }
 0x23d   : > { %865 = vmatprep.subr.bf16.mxu1 %v864_v14  ;;  %v612_v44 = vmul.f32 %v610_v41, %v1283_v6  ;;  %v613_v45 = vmul.f32 %v611_v42, %v1286_v11 }
 0x23e   : > { %867 = vmatpush1.bf16.msra.mxu1 %v866_v15 }
 0x23f   : > { %v619_v43 = vpop.permute.xlu1 %618 }
 0x240   : > { %v620_v52 = vsel %vm413_vm5, %v617_v40, %v619_v43  ;;  %v621_v53 = vsel %vm413_vm5, %v619_v43, %v617_v40 }
 0x241   : > { %v622_v46 = vmul.f32 %v620_v52, %v1267_v58  ;;  %v623_v47 = vmul.f32 %v621_v53, %v1272_v61  ;;  %v636_v61 = vld [vmem:[%s1440_s4] sm:$0xff] }
 0x243   : > { %v629_v49 = vpop.permute.xlu1 %628  ;;  %v868_v50 = vpack.c.bf16 %v623_v47, %v613_v45  ;;  %v870_v51 = vpack.c.bf16 %v622_v46, %v612_v44 }
 0x244   : > { %v631_v54 = vsel %vm438_vm7, %v629_v49, %v627_v48  ;;  %v630_v55 = vsel %vm438_vm7, %v627_v48, %v629_v49 }
 0x245   : > { %v633_v6 = vmul.f32 %v1297_v31, %v631_v54  ;;  %869 = vmatprep.subr.bf16.mxu1 %v868_v50  ;;  %v632_v58 = vmul.f32 %v1295_v30, %v630_v55 }
 0x246   : > { %871 = vmatpush1.bf16.msra.mxu1 %v870_v51 }
 0x247   : > { %681 = vmatprep.subr.mxu1 %v633_v6 }
 0x24a   : > { %682 = vmatpush1.msra.mxu1 %v632_v58 }
 0x24b   : > { %840 = vmatmul.mubr.msk.f32.vlgmr.msra.gmra.mrb[0].mxu1 %vm661_vm10, %v636_v61 }
 0x24c   : > { %v659_v11 = vpop.permute.xlu0 %658 }
 0x31e   : > { %v731_v7 = vpop.f32.mrb[0].mxu1 }
 0x31f   : > { %v732_v56 = vadd.f32 %v731_v7, %v659_v11  ;;  %v733_v57 = vpop.f32.mrb[1].mxu1 }
 0x320   : > { %v734_v31 = vadd.f32 %v733_v57, %v659_v11 }
 0x321   : > { %v736_v59 = vmax.f32 %v732_v56, 0.0 }
 0x322   : > { %v737_v30 = vmax.f32 %v734_v31, 0.0 }
 0x323   : > { %738 = vst [vmem:[%s259_s19] sm:$0xff] %v736_v59 }
 0x324   : > { %739 = vst [vmem:[%s259_s19 + $0x8] sm:$0xff] %v737_v30 }
 0x325   : > { %977 = shalt.err (!%p974_p7)
}
 0x326   : > { %s978_s12 = scalar_lea.hbm %s1394_s29, 256  ;;  %s982_s9 = scalar_lea.hbm %s1442_s6, 512 }
 0x327   : > { %p979_p8 = scmp.ne.s32.totalorder %s1394_s29, %s978_s12  ;;  %p983_p1 = scmp.lt.u32.totalorder %s1394_s29, %s1442_s6 }
 0x328   : > { %p984_p0 = scmp.lt.u32.totalorder %s982_s9, %s978_s12  ;;  %p986_p6 = scmp.lt.u32.totalorder %s978_s12, %s1394_s29 }
 0x329   : > { %p980_p11 = pnand %p979_p8, %p1453_p9 }
 0x32a   : > { %p985_p5 = por %p984_p0, %p983_p1 }
 0x32b   : > { %p981_p13 = pneg %p980_p11 }
 0x32c   : > { %p987_p10 = por %p986_p6, %p985_p5 }
 0x32e   : > { %p988_p12 = pnand %p987_p10, %p981_p13 }
 0x330   : > { %991 = shalt.err (!%p988_p12)
}
 0x331   : > { %876 = dma.vmem_to_hbm [thread:$0]  (%p1453_p9), %s1396_s20, 256, %s1394_s29, %s741_s10  }
 0x332 PF: > { %p888_p2 = scmp.ge.s32.totalorder %s1030_s24, 2  ;;  %s767_s19 = sand.u32 1, %s1018_s21  }
 0x333   : > { %p1454_p3 = scmp.ne.s32.totalorder %s1447_s8, 0  ;;  %s768_s26 = scalar_lea.sflag [#allocation6], %s767_s19 }
 0x335   : > { %p883_p4 = pnand %p888_p2, %p1454_p3 }
 0x337   : > { %1013 = dma.done.wait (!%p883_p4), %s768_s26, 256  }
 0x338   : > { %1015 = vsyncadd (!%p883_p4), %s768_s26, 4294967040  ;;  %p17_p7 = scmp.ge.s32.totalorder %s1106_s27, 4   ;;  %s1455_s21 = smov %s1022_s22 }
 0x339   : > { %s1456_s22 = smov %s1026_s23  ;;  %s1457_s23 = smov %s1117_s30 }
 0x33a   : > { %s1458_s24 = smov %s1106_s27  ;;  %19 = sbr.rel (!%p17_p7) target bundleno = 4 (0x4), region = 84 }
 0x341   :  { %773 = vsyncpa [#allocation5], 1 }
 0x342   :  { %775 = vsyncpa [#allocation5 + $0x1], 1 }
 0x343   :  { %776 = vsyncpa [#allocation6], 1 }
 0x344   :  { %778 = vsyncpa [#allocation6 + $0x1], 1 }

</bundles_post_ra>
